<compile_context>
chip_gen: v5e
topology: v5e:2x2
jax: 0.10.0
libtpu: 0.0.40
codegen_flags: <defaults>
</compile_context>

<pallas_src>
import functools

import jax
import jax.numpy as jnp
from jax.experimental import pallas as pl
from jax.experimental.pallas import tpu as pltpu


# ----------------------------- small helpers ---------------------------------


def _sigmoid(y, approx):
    # Exact: 1/(1+exp(-y)) (same as torch.sigmoid).  approx=True replaces the
    # exact divide with the EUP reciprocal, dropping the Newton-refine VPU work
    # (useful on v7x where the apply pass is EUP-bound, not HBM-bound).
    z = 1.0 + jnp.exp(-y)
    if approx:
        return pl.reciprocal(z, approx=True)
    return 1.0 / z


def _gumbel(s, gumbel_eps):
    return -jnp.log(-jnp.log(s + gumbel_eps) + gumbel_eps)


def _vmem_capacity_bytes():
    try:
        info = pltpu.get_tpu_info()
        for name in ("vmem_capacity_bytes", "vmem_bytes", "vmem_size_bytes"):
            v = getattr(info, name, None)
            if v:
                return int(v)
    except Exception:
        pass
    return 64 << 20  # conservative default (v7x per-TensorCore VMEM)


def _pick_l_tile(L, per_lane_bytes, tile_budget):
    """Lane-tile width: a multiple of 128 sized to the per-generation VMEM budget."""
    tl_cap = max(128, (tile_budget // max(per_lane_bytes, 1)) // 128 * 128)
    l_rounded = -(-L // 128) * 128
    if l_rounded <= tl_cap:
        return l_rounded  # single L tile (pads < 128 lanes at most)
    best = 128
    t = tl_cap
    while t >= 128:  # largest multiple-of-128 divisor of the 128-rounded L
        if l_rounded % t == 0:
            best = t
            break
        t -= 128
    # If the only divisor is much smaller than the budget, prefer padding L up to
    # budget-sized tiles as long as the pad waste stays <= 1/8 of the real data.
    padded_L = -(-L // tl_cap) * tl_cap
    if best < tl_cap // 4 and (padded_L - L) * 8 <= L:
        return tl_cap
    return best


# ----------------------------- kernels ----------------------------------------


def _fused_kernel(x_ref, gamma_ref, beta_ref, o_ref, *,
                  count, bn_eps, gumbel_eps, approx_sigmoid):
    """Small-tensor fast path: whole x resident in VMEM (1 read + 1 write of x)."""
    x = x_ref[...].astype(jnp.float32)                          # (N, C, L)
    mean = jnp.sum(x, axis=(0, 2), keepdims=True) / count       # (1, C, 1)
    var = jnp.sum(x * x, axis=(0, 2), keepdims=True) / count - mean * mean
    inv_std = jax.lax.rsqrt(var + bn_eps)
    scale = gamma_ref[...][None, :, :] * inv_std                 # (1, C, 1)
    bias = beta_ref[...][None, :, :] - mean * scale
    s = _sigmoid(x * scale + bias, approx_sigmoid)
    o_ref[...] = _gumbel(s, gumbel_eps).astype(o_ref.dtype)


def _stats_kernel(x_ref, sum_ref, sumsq_ref):
    """Phase 1: per-core partial per-channel sum / sum-of-squares over L tiles."""
    l = pl.program_id(1)

    @pl.when(l == 0)
    def _init():
        sum_ref[...] = jnp.zeros_like(sum_ref)
        sumsq_ref[...] = jnp.zeros_like(sumsq_ref)

    x = x_ref[...].astype(jnp.float32)                           # (N, C, TL)
    # Mosaic reduces axis 0 and the TL/128 vreg columns with VPU adds and only the
    # final in-vreg lane tree on the XLU, so this stays DMA-bound on all chips.
    sum_ref[...] += jnp.sum(x, axis=(0, 2), keepdims=True)       # (1, C, 1)
    sumsq_ref[...] += jnp.sum(x * x, axis=(0, 2), keepdims=True)


def _apply_kernel(x_ref, scale_ref, bias_ref, o_ref, *, gumbel_eps, approx_sigmoid):
    """Phase 2: fused normalize + sigmoid + gumbel on one (N*C, TL) tile."""
    x = x_ref[...].astype(jnp.float32)                           # (NC, TL)
    y = x * scale_ref[...] + bias_ref[...]                       # (NC, 1) lane-broadcast
    s = _sigmoid(y, approx_sigmoid)
    o_ref[...] = _gumbel(s, gumbel_eps).astype(o_ref.dtype)


# ----------------------------- wrapper -----------------------------------------


def gumbel_block(x_nchw, gamma, beta, *, bn_eps=1e-5, gumbel_eps=1e-6,
                 approx_sigmoid=False, use_fast_path=None, max_tile_bytes=None):
    """BatchNorm2d (batch stats) -> sigmoid -> -log(-log(. + eps) + eps)."""
    N, C, H, W = x_nchw.shape
    L = H * W
    NC = N * C
    count = float(N * L)
    itemsize = x_nchw.dtype.itemsize

    vmem_cap = _vmem_capacity_bytes()
    # Generation-aware tile budget: ~8 MiB tiles on 128 MiB-VMEM chips (v5e/v6e),
    # ~4 MiB on v7x (64 MiB); the apply pass double-buffers read + write streams.
    tile_budget = (8 << 20) if vmem_cap >= (96 << 20) else (4 << 20)
    if max_tile_bytes is not None:
        tile_budget = int(max_tile_bytes)

    gamma_c1 = jnp.asarray(gamma, jnp.float32).reshape(C, 1)
    beta_c1 = jnp.asarray(beta, jnp.float32).reshape(C, 1)

    # ---------- small-tensor fast path: 1 read + 1 write of x --------------------
    fast_bytes = NC * L * (2 * itemsize + 16)  # in + out + ~4 f32 temporaries
    if use_fast_path is None:
        use_fast_path = (L % 128 == 0) and fast_bytes <= int(0.35 * vmem_cap)
    if use_fast_path:
        x3 = x_nchw.reshape(N, C, L)           # free view, no NCHW transpose
        full = pl.BlockSpec((N, C, L), lambda i: (0, 0, 0))
        vec = pl.BlockSpec((C, 1), lambda i: (0, 0))
        out = pl.pallas_call(
            functools.partial(_fused_kernel, count=count, bn_eps=bn_eps,
                              gumbel_eps=gumbel_eps, approx_sigmoid=approx_sigmoid),
            out_shape=jax.ShapeDtypeStruct((N, C, L), x_nchw.dtype),
            grid=(1,),
            in_specs=[full, vec, vec],
            out_specs=full,
            compiler_params=pltpu.CompilerParams(
                dimension_semantics=("arbitrary",),
                vmem_limit_bytes=int(min(0.75 * vmem_cap,
                                         max(fast_bytes + (8 << 20), 32 << 20)))),
        )(x3, gamma_c1, beta_c1)
        return out.reshape(N, C, H, W)

    # ---------- two-phase streaming path: 2 reads + 1 write of x -----------------
    TL = _pick_l_tile(L, NC * itemsize, tile_budget)
    L_pad = -(-L // TL) * TL
    nL = L_pad // TL

    x2 = x_nchw.reshape(NC, L)                 # free, layout-preserving view
    if L_pad != L:
        # Zero padding keeps sum/sumsq exact with the true `count`; padded output
        # columns are sliced off below.
        x2 = jnp.pad(x2, ((0, 0), (0, L_pad - L)))
    x3 = x2.reshape(N, C, L_pad)               # free view for the stats pass

    tile_bytes = NC * TL * itemsize
    vmem_limit = int(min(0.75 * vmem_cap, max(4 * tile_bytes + (8 << 20), 32 << 20)))

    # Phase 1: per-channel batch statistics.  The leading size-2 "parallel" axis
    # lets v7x run the reduction on both TensorCores (partials combined below);
    # it is neutral on single-TC chips.
    ncore = 2 if (nL % 2 == 0 and nL >= 2) else 1
    nlc = nL // ncore
    sums, sumsqs = pl.pallas_call(
        _stats_kernel,
        out_shape=(jax.ShapeDtypeStruct((ncore, C, 1), jnp.float32),
                   jax.ShapeDtypeStruct((ncore, C, 1), jnp.float32)),
        grid=(ncore, nlc),
        in_specs=[pl.BlockSpec((N, C, TL), lambda c, l: (0, 0, c * nlc + l))],
        out_specs=(pl.BlockSpec((1, C, 1), lambda c, l: (c, 0, 0)),
                   pl.BlockSpec((1, C, 1), lambda c, l: (c, 0, 0))),
        compiler_params=pltpu.CompilerParams(
            dimension_semantics=("parallel", "arbitrary"),
            vmem_limit_bytes=vmem_limit),
    )(x3)

    # Tiny per-channel finalize (plain XLA): mean/var -> per-row scale/bias.
    # NOTE: E[x^2]-mean^2 in f32; for data with huge means use a centered 2nd pass.
    tot = jnp.sum(sums, axis=0)[:, 0]
    totsq = jnp.sum(sumsqs, axis=0)[:, 0]
    mean = tot / count
    var = totsq / count - mean * mean
    inv_std = jax.lax.rsqrt(var + bn_eps)
    scale_c = jnp.asarray(gamma, jnp.float32) * inv_std
    bias_c = jnp.asarray(beta, jnp.float32) - mean * scale_c
    scale_nc = jnp.tile(scale_c, (N,))[:, None]          # row n*C+c -> channel c
    bias_nc = jnp.tile(bias_c, (N,))[:, None]

    # Phase 2: fused normalize + sigmoid + gumbel.  The (N*C, TL) view keeps the
    # sublane axis dense even for small C (an (N,C,TL) block with C<8 wastes vregs).
    x_spec = pl.BlockSpec((NC, TL), lambda l: (0, l))
    vec_spec = pl.BlockSpec((NC, 1), lambda l: (0, 0))   # VMEM-resident across steps
    out2 = pl.pallas_call(
        functools.partial(_apply_kernel, gumbel_eps=gumbel_eps,
                          approx_sigmoid=approx_sigmoid),
        out_shape=jax.ShapeDtypeStruct((NC, L_pad), x_nchw.dtype),
        grid=(nL,),
        in_specs=[x_spec, vec_spec, vec_spec],
        out_specs=x_spec,
        compiler_params=pltpu.CompilerParams(
            dimension_semantics=("parallel",),           # megacore-shardable
            vmem_limit_bytes=vmem_limit),
    )(x2, scale_nc, bias_nc)

    if L_pad != L:
        out2 = out2[:, :L]
    return out2.reshape(N, C, H, W)


# ----------------------------- reference & test --------------------------------


def _reference(x_nchw, gamma, beta, *, bn_eps=1e-5, gumbel_eps=1e-6):
    """Pure-JAX reference of the same forward pass."""
    x = x_nchw.astype(jnp.float32)
    mean = jnp.mean(x, axis=(0, 2, 3), keepdims=True)
    var = jnp.mean((x - mean) ** 2, axis=(0, 2, 3), keepdims=True)  # biased, as BN
    y = (x - mean) * jax.lax.rsqrt(var + bn_eps)
    y = y * gamma.reshape(1, -1, 1, 1) + beta.reshape(1, -1, 1, 1)
    s = jax.nn.sigmoid(y)
    return -jnp.log(-jnp.log(s + gumbel_eps) + gumbel_eps)


if __name__ == "__main__":
    key = jax.random.PRNGKey(0)
    N, C, H, W = 2, 4, 16, 16
    x = jax.random.normal(key, (N, C, H, W), dtype=jnp.float32)
    # nn.BatchNorm2d default affine init is ones/zeros; use non-trivial values to
    # actually exercise the affine path.
    gamma = 1.0 + 0.1 * jnp.arange(C, dtype=jnp.float32)
    beta = 0.05 * jnp.arange(C, dtype=jnp.float32)
    ref = _reference(x, gamma, beta)

    # 1) auto path (small shape -> single fused VMEM-resident kernel, 1R+1W).
    out = jax.block_until_ready(gumbel_block(x, gamma, beta))
    assert out.shape == (N, C, H, W)
    assert jnp.allclose(out, ref, atol=1e-4, rtol=1e-4), "fast path mismatch"

    # 2) force the two-phase streaming path on the same input.
    out2 = jax.block_until_ready(gumbel_block(x, gamma, beta, use_fast_path=False))
    assert jnp.allclose(out2, ref, atol=1e-4, rtol=1e-4), "two-phase mismatch"

    # 3) multi-tile streaming path + two-way stats split (tiny tile budget).
    x3 = jax.random.normal(jax.random.PRNGKey(0), (2, 4, 32, 32), dtype=jnp.float32)
    ref3 = _reference(x3, gamma, beta)
    out3 = jax.block_until_ready(
        gumbel_block(x3, gamma, beta, use_fast_path=False, max_tile_bytes=4096))
    assert jnp.allclose(out3, ref3, atol=1e-4, rtol=1e-4), "tiled path mismatch"

    # 4) L not a multiple of 128 -> zero-padded streaming path.
    x4 = jax.random.normal(jax.random.PRNGKey(0), (2, 4, 10, 10), dtype=jnp.float32)
    ref4 = _reference(x4, gamma, beta)
    out4 = jax.block_until_ready(gumbel_block(x4, gamma, beta))
    assert jnp.allclose(out4, ref4, atol=1e-4, rtol=1e-4), "padded path mismatch"

    # 5) approx-reciprocal sigmoid (v7x EUP optimization): compile/run smoke test.
    out5 = jax.block_until_ready(gumbel_block(x, gamma, beta, approx_sigmoid=True))
    assert out5.shape == (N, C, H, W)

    print("KERNEL_OK")
</pallas_src>

<mosaic_0001>
module attributes {stable_mosaic.version = 11 : i64} {
  func.func @_fused_kernel(%arg0: i32, %arg1: memref<2x4x256xf32, #tpu.memory_space<vmem>>, %arg2: memref<4x1xf32, #tpu.memory_space<vmem>>, %arg3: memref<4x1xf32, #tpu.memory_space<vmem>>, %arg4: memref<2x4x256xf32, #tpu.memory_space<vmem>>) attributes {dimension_semantics = [#tpu.dimension_semantics<arbitrary>], iteration_bounds = array<i64: 1>, scalar_prefetch = 0 : i64, scratch_operands = 0 : i64, tpu.core_type = #tpu.core_type<tc>, window_params = [{pipeline_mode = #tpu.pipeline_mode<synchronous>, transform_indices = @transform_0, window_bounds = array<i64: 2, 4, 256>}, {pipeline_mode = #tpu.pipeline_mode<synchronous>, transform_indices = @transform_1, window_bounds = array<i64: 4, 1>}, {pipeline_mode = #tpu.pipeline_mode<synchronous>, transform_indices = @transform_2, window_bounds = array<i64: 4, 1>}, {pipeline_mode = #tpu.pipeline_mode<synchronous>, transform_indices = @transform_3, window_bounds = array<i64: 2, 4, 256>}]} {
    %c0 = arith.constant 0 : index
    %c0_0 = arith.constant 0 : index
    %c0_1 = arith.constant 0 : index
    %0 = vector.load %arg1[%c0, %c0_0, %c0_1] : memref<2x4x256xf32, #tpu.memory_space<vmem>>, vector<2x4x256xf32>
    %cst = arith.constant dense<0.000000e+00> : vector<4xf32>
    %1 = vector.multi_reduction <add>, %0, %cst [0, 2] : vector<2x4x256xf32> to vector<4xf32>
    %2 = vector.shape_cast %1 : vector<4xf32> to vector<1x4x1xf32>
    %cst_2 = arith.constant 5.120000e+02 : f32
    %3 = vector.broadcast %cst_2 : f32 to vector<1x4x1xf32>
    %4 = arith.divf %2, %3 : vector<1x4x1xf32>
    %5 = arith.mulf %0, %0 : vector<2x4x256xf32>
    %cst_3 = arith.constant dense<0.000000e+00> : vector<4xf32>
    %6 = vector.multi_reduction <add>, %5, %cst_3 [0, 2] : vector<2x4x256xf32> to vector<4xf32>
    %7 = vector.shape_cast %6 : vector<4xf32> to vector<1x4x1xf32>
    %cst_4 = arith.constant 5.120000e+02 : f32
    %8 = vector.broadcast %cst_4 : f32 to vector<1x4x1xf32>
    %9 = arith.divf %7, %8 : vector<1x4x1xf32>
    %10 = arith.mulf %4, %4 : vector<1x4x1xf32>
    %11 = arith.subf %9, %10 : vector<1x4x1xf32>
    %cst_5 = arith.constant 9.99999974E-6 : f32
    %12 = vector.broadcast %cst_5 : f32 to vector<1x4x1xf32>
    %13 = arith.addf %11, %12 : vector<1x4x1xf32>
    %14 = math.rsqrt %13 : vector<1x4x1xf32>
    %c0_6 = arith.constant 0 : index
    %c0_7 = arith.constant 0 : index
    %15 = vector.load %arg2[%c0_6, %c0_7] : memref<4x1xf32, #tpu.memory_space<vmem>>, vector<4x1xf32>
    %16 = vector.shape_cast %15 : vector<4x1xf32> to vector<1x4x1xf32>
    %17 = arith.mulf %16, %14 : vector<1x4x1xf32>
    %c0_8 = arith.constant 0 : index
    %c0_9 = arith.constant 0 : index
    %18 = vector.load %arg3[%c0_8, %c0_9] : memref<4x1xf32, #tpu.memory_space<vmem>>, vector<4x1xf32>
    %19 = vector.shape_cast %18 : vector<4x1xf32> to vector<1x4x1xf32>
    %20 = arith.mulf %4, %17 : vector<1x4x1xf32>
    %21 = arith.subf %19, %20 : vector<1x4x1xf32>
    %22 = vector.broadcast %17 : vector<1x4x1xf32> to vector<2x4x256xf32>
    %23 = arith.mulf %0, %22 : vector<2x4x256xf32>
    %24 = vector.broadcast %21 : vector<1x4x1xf32> to vector<2x4x256xf32>
    %25 = arith.addf %23, %24 : vector<2x4x256xf32>
    %cst_10 = arith.constant 0.000000e+00 : f32
    %26 = vector.broadcast %cst_10 : f32 to vector<2x4x256xf32>
    %27 = arith.subf %26, %25 : vector<2x4x256xf32>
    %28 = math.exp %27 : vector<2x4x256xf32>
    %cst_11 = arith.constant 1.000000e+00 : f32
    %29 = vector.broadcast %cst_11 : f32 to vector<2x4x256xf32>
    %30 = arith.addf %29, %28 : vector<2x4x256xf32>
    %cst_12 = arith.constant 1.000000e+00 : f32
    %31 = vector.broadcast %cst_12 : f32 to vector<2x4x256xf32>
    %32 = arith.divf %31, %30 : vector<2x4x256xf32>
    %cst_13 = arith.constant 9.99999997E-7 : f32
    %33 = vector.broadcast %cst_13 : f32 to vector<2x4x256xf32>
    %34 = arith.addf %32, %33 : vector<2x4x256xf32>
    %35 = math.log %34 : vector<2x4x256xf32>
    %cst_14 = arith.constant 0.000000e+00 : f32
    %36 = vector.broadcast %cst_14 : f32 to vector<2x4x256xf32>
    %37 = arith.subf %36, %35 : vector<2x4x256xf32>
    %cst_15 = arith.constant 9.99999997E-7 : f32
    %38 = vector.broadcast %cst_15 : f32 to vector<2x4x256xf32>
    %39 = arith.addf %37, %38 : vector<2x4x256xf32>
    %40 = math.log %39 : vector<2x4x256xf32>
    %cst_16 = arith.constant 0.000000e+00 : f32
    %41 = vector.broadcast %cst_16 : f32 to vector<2x4x256xf32>
    %42 = arith.subf %41, %40 : vector<2x4x256xf32>
    %c0_17 = arith.constant 0 : index
    %c0_18 = arith.constant 0 : index
    %c0_19 = arith.constant 0 : index
    %43 = vector.load %arg4[%c0_17, %c0_18, %c0_19] : memref<2x4x256xf32, #tpu.memory_space<vmem>>, vector<2x4x256xf32>
    tpu.vector_store %arg4[%c0_17, %c0_18, %c0_19], %42 {strides = array<i32>} : memref<2x4x256xf32, #tpu.memory_space<vmem>>, vector<2x4x256xf32>,
    return
  }
  func.func @transform_0(%arg0: i32) -> (i32, i32, i32) {
    %c0_i32 = arith.constant 0 : i32
    %c0_i32_0 = arith.constant 0 : i32
    %c0_i32_1 = arith.constant 0 : i32
    %c0_i32_2 = arith.constant 0 : i32
    return %c0_i32, %c0_i32_0, %c0_i32_1 : i32, i32, i32
  }
  func.func @transform_1(%arg0: i32) -> (i32, i32) {
    %c0_i32 = arith.constant 0 : i32
    %c0_i32_0 = arith.constant 0 : i32
    %c0_i32_1 = arith.constant 0 : i32
    return %c0_i32, %c0_i32_0 : i32, i32
  }
  func.func @transform_2(%arg0: i32) -> (i32, i32) {
    %c0_i32 = arith.constant 0 : i32
    %c0_i32_0 = arith.constant 0 : i32
    %c0_i32_1 = arith.constant 0 : i32
    return %c0_i32, %c0_i32_0 : i32, i32
  }
  func.func @transform_3(%arg0: i32) -> (i32, i32, i32) {
    %c0_i32 = arith.constant 0 : i32
    %c0_i32_0 = arith.constant 0 : i32
    %c0_i32_1 = arith.constant 0 : i32
    %c0_i32_2 = arith.constant 0 : i32
    return %c0_i32, %c0_i32_0, %c0_i32_1 : i32, i32, i32
  }
}

</mosaic_0001>

<bundles_post_ra>
// kernel: tpu_custom_call.1
= control target key start
LH: loop header
LB: loop body
LE: loop exit
PB: predicated region body
PF: predicated region fallthrough
CT: control target
= control target key end

     0   :  { %8 = vsyncpa [#allocation3], 0  ;;  %s350_s0 = inlined_call_operand.hbm [shape: f32[2,4,256], index: 0, kind: input, shape index: {}]   ;;  %s351_s1 = inlined_call_operand.vmem [shape: f32[4,1], index: 1, kind: input, shape index: {}]   ;;  %s352_s2 = inlined_call_operand.vmem [shape: f32[4,1], index: 2, kind: input, shape index: {}]   ;;  %s353_s3 = inlined_call_operand.hbm [shape: f32[2,4,256], index: 3, kind: output, shape index: {}]  }
   0x1   :  { %9 = vsyncpa [#allocation4], 0  ;;  %s14_s14 = sshll.u32 %s350_s0, 4  ;;  %s285_s15 = smov [#allocation2]   ;;  %s15_s14 = int_to_ptr.hbm [resolvable:$true] %s14_s14 }
   0x2   :  { %s16_s16 = sshll.u32 %s285_s15, 4  ;;  %s286_s17 = smov 128   ;;  %s17_s16 = int_to_ptr.vmem [resolvable:$true] %s16_s16 }
   0x3   :  { %s287_s18 = smov 8  }
   0x4   :  { %22 = dma.hbm_to_vmem [thread:$0]  %s15_s14, 256, %s17_s16, [#allocation3], %s286_s17, %s286_s17, %s287_s18  }
   0x5   :  { %281 = dma.done.wait [#allocation3], 256  }
   0x6   :  { %282 = vsyncadd [#allocation3], 4294967040  ;;  %v318_v0 = vld [vmem:[#allocation2] sm:$0xff]  ;;  %v320_v1 = vld [vmem:[#allocation2 + $0x8] sm:$0xff]  ;;  %vm46_vm0 = vcmask 1043456   ;;  %v288_v26 = vmov 512.0  }
   0x7   :  { %35 = vst [vmem:[#allocation1] ss:$2 sm:$0xff] %v318_v0  ;;  %v64_v2 = vmul.f32 %v318_v0, %v318_v0  ;;  %v65_v3 = vmul.f32 %v320_v1, %v320_v1  ;;  %213 = vrcp.f32 %v288_v26  ;;  %v289_v30 = vmov 0   ;;  %v102_v47 = vld [vmem:[%s351_s1] sm:$0xf]  ;;  %s291_s1 = smov [#allocation5]  }
   0x8   :  { %39 = vst [vmem:[#allocation1 + $0x10] ss:$2 sm:$0xff] %v320_v1  ;;  %211 = vset.pattern.permute.xlu1 %v289_v30  ;;  %212 = vset.pattern.permute.xlu0 %v289_v30  ;;  %v104_v51 = vld [vmem:[%s352_s2] sm:$0xf]  ;;  %v290_v53 = vmov 839922192  }
   0x9   :  { %v112_v54 = vunpack.c.l.s4 %v290_v53  ;;  %s189_s2 = sshll.u32 %s291_s1, 4  ;;  %s191_s24 = sshll.u32 %s353_s3, 4  ;;  %s190_s2 = int_to_ptr.vmem [resolvable:$true] %s189_s2  ;;  %s192_s24 = int_to_ptr.hbm [resolvable:$true] %s191_s24 }
   0xb   :  { %v113_v56 = vunpack.c.0.s8 %v112_v54 }
   0xd   :  { %v214_v27 = vpop.eup %213 }
   0xe   :  { %v36_v4 = vld.sshfl [vmem:[#allocation1] sm:$0xff pattern:$0x75316420]  ;;  %v37_v5 = vld.sshfl [vmem:[#allocation1 + $0x8] sm:$0xff pattern:$0x75316420]  ;;  %vm61_vm1 = vweird.f32 %v214_v27 }
   0xf   :  { %v40_v6 = vld.sshfl [vmem:[#allocation1 + $0x10] sm:$0xff pattern:$0x75316420]  ;;  %v41_v7 = vld.sshfl [vmem:[#allocation1 + $0x18] sm:$0xff pattern:$0x75316420] }
  0x10   :  { %v47_v8 = vsel %vm46_vm0, %v36_v4, 0.0  ;;  %v48_v9 = vsel %vm46_vm0, %v37_v5, 0.0  ;;  %v50_v10 = vsel %vm46_vm0, %v40_v6, 0.0  ;;  %68 = vst [vmem:[#allocation1] ss:$2 sm:$0xff] %v64_v2  ;;  %v52_v12 = vsel %vm46_vm0, %v41_v7, 0.0 }
  0x11   :  { %v49_v11 = vadd.f32 %v48_v9, %v47_v8  ;;  %72 = vst [vmem:[#allocation1 + $0x10] ss:$2 sm:$0xff] %v65_v3  ;;  %v57_v28 = vmul.f32 512.0, %v214_v27 }
  0x13   :  { %v51_v13 = vadd.f32 %v50_v10, %v49_v11  ;;  %v58_v29 = vsub.f32 1.0, %v57_v28 }
  0x15   :  { %v53_v14 = vadd.f32 %v52_v12, %v51_v13  ;;  %v59_v31 = vmul.f32 %v214_v27, %v58_v29 }
  0x17   :  { %54 = vadd.xlane.f32.xlu0 %v53_v14  ;;  %v69_v15 = vld.sshfl [vmem:[#allocation1] sm:$0xff pattern:$0x75316420]  ;;  %v70_v16 = vld.sshfl [vmem:[#allocation1 + $0x8] sm:$0xff pattern:$0x75316420]  ;;  %v60_v32 = vadd.f32 %v214_v27, %v59_v31 }
  0x18   :  { %v73_v17 = vld.sshfl [vmem:[#allocation1 + $0x10] sm:$0xff pattern:$0x75316420]  ;;  %v74_v18 = vld.sshfl [vmem:[#allocation1 + $0x18] sm:$0xff pattern:$0x75316420] }
  0x19   :  { %v79_v19 = vsel %vm46_vm0, %v69_v15, 0.0  ;;  %v80_v20 = vsel %vm46_vm0, %v70_v16, 0.0  ;;  %v82_v21 = vsel %vm46_vm0, %v73_v17, 0.0  ;;  %v84_v23 = vsel %vm46_vm0, %v74_v18, 0.0 }
  0x1a   :  { %v81_v22 = vadd.f32 %v80_v20, %v79_v19  ;;  %v62_v34 = vsel %vm61_vm1, %v214_v27, %v60_v32 }
  0x1c   :  { %v83_v24 = vadd.f32 %v82_v21, %v81_v22 }
  0x1e   :  { %v85_v25 = vadd.f32 %v84_v23, %v83_v24 }
  0x20   :  { %86 = vadd.xlane.f32.xlu0 %v85_v25 }
  0x8a   :  { %v55_v33 = vpop.xlane.xlu0 %54 }
  0x8b   :  { %v63_v35 = vmul.f32 %v62_v34, %v55_v33 }
  0x8d   :  { %v89_v37 = vmul.f32 %v63_v35, %v63_v35 }
  0x93   :  { %v87_v36 = vpop.xlane.xlu0 %86 }
  0x94   :  { %v88_v38 = vmul.f32 %v87_v36, %v62_v34 }
  0x96   :  { %v90_v39 = vsub.f32 %v88_v38, %v89_v37 }
  0x98   :  { %v91_v40 = vadd.f32 1e-05, %v90_v39 }
  0x9a   :  { %215 = vrsqrt.f32 %v91_v40  ;;  %vm98_vm3 = vweird.f32 %v91_v40 }
  0xa0   :  { %v216_v41 = vpop.eup %215 }
  0xa1   :  { %v93_v42 = vmul.f32 %v216_v41, %v91_v40  ;;  %vm99_vm2 = vweird.f32 %v216_v41 }
  0xa2   :  { %vm100_vm4 = vmor %vm98_vm3, %vm99_vm2 }
  0xa3   :  { %v94_v43 = vmul.f32 %v216_v41, %v93_v42 }
  0xa5   :  { %v95_v44 = vmul.f32 0.5, %v94_v43 }
  0xa7   :  { %v96_v45 = vsub.f32 1.5, %v95_v44 }
  0xa9   :  { %v97_v46 = vmul.f32 %v216_v41, %v96_v45 }
  0xab   :  { %v101_v48 = vsel %vm100_vm4, %v216_v41, %v97_v46 }
  0xac   :  { %v103_v49 = vmul.f32 %v102_v47, %v101_v48 }
  0xae   :  { %109 = vperm.xlu1 %211, %v103_v49   ;;  %v105_v50 = vmul.f32 %v103_v49, %v63_v35 }
  0xb0   :  { %v106_v52 = vsub.f32 %v104_v51, %v105_v50 }
  0xb6   :  { %120 = vperm.xlu1 %211, %v106_v52  }
 0x120   :  { %v110_v55 = vpop.permute.xlu1 %109 }
 0x121   :  { %v114_v57 = vperm.slane %v110_v55, %v113_v56 }
 0x123   :  { %v116_v59 = vmul.f32 %v114_v57, %v318_v0  ;;  %v117_v60 = vmul.f32 %v114_v57, %v320_v1 }
 0x128   :  { %v121_v58 = vpop.permute.xlu1 %120 }
 0x129   :  { %v125_v61 = vperm.slane %v121_v58, %v113_v56 }
 0x12b   :  { %v127_v62 = vadd.f32 %v125_v61, %v116_v59  ;;  %v128_v63 = vadd.f32 %v125_v61, %v117_v60 }
 0x12d   :  { %v129_v2 = vsub.f32 0.0, %v127_v62  ;;  %v130_v3 = vsub.f32 0.0, %v128_v63 }
 0x12f   :  { %v131_v4 = vmul.f32 1.442695, %v129_v2  ;;  %v133_v5 = vmul.f32 1.442695, %v130_v3 }
 0x131   :  { %217 = vpow2.f32 %v131_v4 }
 0x132   :  { %219 = vpow2.f32 %v133_v5 }
 0x137   :  { %v218_v6 = vpop.eup %217 }
 0x138   :  { %v220_v7 = vpop.eup %219  ;;  %v135_v8 = vadd.f32 1.0, %v218_v6 }
 0x139   :  { %v136_v9 = vadd.f32 1.0, %v220_v7 }
 0x13a   :  { %221 = vrcp.f32 %v135_v8  ;;  %v148_v13 = vand.u32 2147483648, %v135_v8  ;;  %v146_v17 = vand.u32 2147483647, %v135_v8  ;;  %vm142_vm7 = vweird.f32 %v135_v8 }
 0x13b   :  { %223 = vrcp.f32 %v136_v9  ;;  %v163_v16 = vand.u32 2147483648, %v136_v9  ;;  %v161_v19 = vand.u32 2147483647, %v136_v9  ;;  %vm157_vm8 = vweird.f32 %v136_v9 }
 0x13c   :  { %v149_v21 = vor.u32 1.1754944e-38, %v148_v13  ;;  %vm147_vm10 = vcmp.eq.f32.partialorder %v146_v17, 8.507059e+37 }
 0x13d   :  { %v164_v24 = vor.u32 1.1754944e-38, %v163_v16  ;;  %vm162_vm12 = vcmp.eq.f32.partialorder %v161_v19, 8.507059e+37 }
 0x140   :  { %v222_v10 = vpop.eup %221 }
 0x141   :  { %v224_v11 = vpop.eup %223  ;;  %v138_v0 = vmul.f32 %v222_v10, %v135_v8  ;;  %vm143_vm5 = vweird.f32 %v222_v10 }
 0x142   :  { %v153_v12 = vmul.f32 %v224_v11, %v136_v9  ;;  %vm158_vm6 = vweird.f32 %v224_v11  ;;  %vm144_vm9 = vmor %vm142_vm7, %vm143_vm5 }
 0x143   :  { %v139_v1 = vsub.f32 1.0, %v138_v0  ;;  %vm159_vm11 = vmor %vm157_vm8, %vm158_vm6 }
 0x144   :  { %v154_v14 = vsub.f32 1.0, %v153_v12 }
 0x145   :  { %v140_v15 = vmul.f32 %v222_v10, %v139_v1 }
 0x146   :  { %v155_v18 = vmul.f32 %v224_v11, %v154_v14 }
 0x147   :  { %v141_v20 = vadd.f32 %v222_v10, %v140_v15 }
 0x148   :  { %v156_v22 = vadd.f32 %v224_v11, %v155_v18 }
 0x149   :  { %v145_v23 = vsel %vm144_vm9, %v222_v10, %v141_v20 }
 0x14a   :  { %v150_v25 = vsel %vm147_vm10, %v149_v21, %v145_v23  ;;  %v160_v26 = vsel %vm159_vm11, %v224_v11, %v156_v22 }
 0x14b   :  { %v165_v27 = vsel %vm162_vm12, %v164_v24, %v160_v26  ;;  %v167_v28 = vadd.f32 1e-06, %v150_v25 }
 0x14c   :  { %v168_v29 = vadd.f32 1e-06, %v165_v27 }
 0x14d   :  { %225 = vlog2.f32 %v167_v28 }
 0x14e   :  { %227 = vlog2.f32 %v168_v29 }
 0x153   :  { %v226_v30 = vpop.eup %225 }
 0x154   :  { %v228_v31 = vpop.eup %227  ;;  %v170_v32 = vmul.f32 0.6931472, %v226_v30 }
 0x155   :  { %v172_v33 = vmul.f32 0.6931472, %v228_v31 }
 0x156   :  { %v173_v34 = vsub.f32 0.0, %v170_v32 }
 0x157   :  { %v174_v35 = vsub.f32 0.0, %v172_v33 }
 0x158   :  { %v175_v36 = vadd.f32 1e-06, %v173_v34 }
 0x159   :  { %v176_v37 = vadd.f32 1e-06, %v174_v35 }
 0x15a   :  { %229 = vlog2.f32 %v175_v36 }
 0x15b   :  { %231 = vlog2.f32 %v176_v37 }
 0x160   :  { %v230_v38 = vpop.eup %229 }
 0x161   :  { %v232_v39 = vpop.eup %231  ;;  %v178_v40 = vmul.f32 0.6931472, %v230_v38 }
 0x162   :  { %v180_v41 = vmul.f32 0.6931472, %v232_v39 }
 0x163   :  { %v181_v42 = vsub.f32 0.0, %v178_v40 }
 0x164   :  { %v182_v43 = vsub.f32 0.0, %v180_v41 }
 0x165   :  { %183 = vst [vmem:[#allocation5] sm:$0xff] %v181_v42 }
 0x166   :  { %184 = vst [vmem:[#allocation5 + $0x8] sm:$0xff] %v182_v43 }
 0x167   :  { %197 = dma.vmem_to_hbm [thread:$0]  %s190_s2, 256, %s192_s24, [#allocation4], %s286_s17, %s286_s17, %s287_s18  }
 0x168   :  { %283 = dma.done.wait [#allocation4], 256  }
 0x169   :  { %284 = vsyncadd [#allocation4], 4294967040 }
 0x16a   :  { %202 = vsyncpa [#allocation3], 1 }
 0x16b   :  { %203 = vsyncpa [#allocation4], 1 }

</bundles_post_ra>
